<compile_context>
chip_gen: v6e
topology: v6e:2x2x1
jax: 0.10.0
libtpu: 0.0.40
codegen_flags: <defaults>
</compile_context>

<pallas_src>
import jax
import jax.numpy as jnp
from jax.experimental import pallas as pl
from jax.experimental.pallas import tpu as pltpu


def mlp_kernel(x_ref, w1_ref, b1_ref, w2_ref, b2_ref, w3_ref, b3_ref, o_ref):
    # x arrives f32; cast to bf16 only for the MXU. All accumulation is f32.
    x = x_ref[...].astype(jnp.bfloat16)

    # fc1 + ReLU   (TILE_B, F) @ (F, 128) -> (TILE_B, 128)
    h1 = jnp.dot(x, w1_ref[...], preferred_element_type=jnp.float32) + b1_ref[...]
    h1 = jnp.maximum(h1, 0.0)

    # fc2 + ReLU   (TILE_B, 128) @ (128, 64) -> (TILE_B, 64)
    h2 = jnp.dot(h1.astype(jnp.bfloat16), w2_ref[...],
                 preferred_element_type=jnp.float32) + b2_ref[...]
    h2 = jnp.maximum(h2, 0.0)

    # fc3          (TILE_B, 64) @ (64, 2) -> (TILE_B, 2)
    logits = jnp.dot(h2.astype(jnp.bfloat16), w3_ref[...],
                     preferred_element_type=jnp.float32) + b3_ref[...]

    # LogSoftmax over dim=1 (numerically stable); exp/log go to the EUP (free slot).
    m = jnp.max(logits, axis=1, keepdims=True)
    shifted = logits - m
    lse = jnp.log(jnp.sum(jnp.exp(shifted), axis=1, keepdims=True))
    o_ref[...] = (shifted - lse).astype(o_ref.dtype)


def ddos_classifier_forward(x, params, *, tile_b=2048):
    """x: (B, F) f32. params: (w1,b1,w2,b2,w3,b3) with W stored (in, out). Returns (B, 2) f32."""
    w1, b1, w2, b2, w3, b3 = params
    B, F = x.shape
    h1_dim, h2_dim, out_classes = w1.shape[1], w2.shape[1], w3.shape[1]

    # --- pick batch tile -----------------------------------------------------
    # Multiple of 8 (sublane constraint). Big enough to amortize the ~0.35 us
    # per-grid-step overhead; small enough that double-buffered f32 x plus f32
    # intermediates stay well inside scoped VMEM on every generation (incl. v7x).
    bytes_per_row = 2 * 4 * F + 4 * (h1_dim + h2_dim + 2 * out_classes)
    vmem_cap_rows = max(8, (16 * 1024 * 1024 // max(bytes_per_row, 1)) // 8 * 8)
    tile_b = min(tile_b, vmem_cap_rows, max(8, ((B + 7) // 8) * 8))
    tile_b = max(8, (tile_b // 8) * 8)

    num_tiles = pl.cdiv(B, tile_b)
    b_pad = num_tiles * tile_b
    if b_pad != B:
        x = jnp.pad(x, ((0, b_pad - B), (0, 0)))

    # Weights bf16 (one-time tiny cast, then VMEM-resident); biases stay f32.
    w1b = w1.astype(jnp.bfloat16)
    w2b = w2.astype(jnp.bfloat16)
    w3b = w3.astype(jnp.bfloat16)

    # Constant block index -> DMA'd once, resident across all grid steps.
    const = lambda arr: pl.BlockSpec(arr.shape, lambda i: (0, 0))

    flops = 2 * b_pad * (F * h1_dim + h1_dim * h2_dim + h2_dim * out_classes)
    bytes_accessed = (x.size * 4                                   # streamed f32 x
                      + (w1b.size + w2b.size + w3b.size) * 2       # bf16 weights
                      + (b1.size + b2.size + b3.size) * 4          # f32 biases
                      + b_pad * out_classes * 4)                   # f32 output

    out = pl.pallas_call(
        mlp_kernel,
        out_shape=jax.ShapeDtypeStruct((b_pad, out_classes), jnp.float32),
        grid=(num_tiles,),
        in_specs=[
            pl.BlockSpec((tile_b, F), lambda i: (i, 0)),   # x streamed per batch tile
            const(w1b), const(b1),
            const(w2b), const(b2),
            const(w3b), const(b3),
        ],
        out_specs=pl.BlockSpec((tile_b, out_classes), lambda i: (i, 0)),
        compiler_params=pltpu.CompilerParams(
            dimension_semantics=("parallel",)),            # megacore split on v7x
        cost_estimate=pl.CostEstimate(
            flops=flops,
            transcendentals=b_pad * (out_classes + 1),
            bytes_accessed=bytes_accessed),
    )(x, w1b, b1, w2b, b2, w3b, b3)

    # Drop padded rows (their log-probs are meaningless).
    return out[:B] if b_pad != B else out


def init_params(key, input_size):
    """nn.Linear-style init (uniform +/- 1/sqrt(fan_in)); W stored as (in, out)."""
    def linear(key, fan_in, fan_out):
        kw, kb = jax.random.split(key)
        bound = 1.0 / jnp.sqrt(fan_in)
        w = jax.random.uniform(kw, (fan_in, fan_out), jnp.float32, -bound, bound)
        b = jax.random.uniform(kb, (1, fan_out), jnp.float32, -bound, bound)
        return w, b

    k1, k2, k3 = jax.random.split(key, 3)
    w1, b1 = linear(k1, input_size, 128)
    w2, b2 = linear(k2, 128, 64)
    w3, b3 = linear(k3, 64, 2)
    return w1, b1, w2, b2, w3, b3


def reference_forward_f32(x, params):
    w1, b1, w2, b2, w3, b3 = params
    h1 = jnp.maximum(x @ w1 + b1, 0.0)
    h2 = jnp.maximum(h1 @ w2 + b2, 0.0)
    logits = h2 @ w3 + b3
    return jax.nn.log_softmax(logits, axis=1)


def reference_forward_bf16(x, params):
    """Pure-JAX reference matching the kernel's bf16-matmul / f32-accumulate numerics."""
    w1, b1, w2, b2, w3, b3 = params
    bf = jnp.bfloat16
    h1 = jnp.dot(x.astype(bf), w1.astype(bf), preferred_element_type=jnp.float32) + b1
    h1 = jnp.maximum(h1, 0.0)
    h2 = jnp.dot(h1.astype(bf), w2.astype(bf), preferred_element_type=jnp.float32) + b2
    h2 = jnp.maximum(h2, 0.0)
    logits = jnp.dot(h2.astype(bf), w3.astype(bf), preferred_element_type=jnp.float32) + b3
    return jax.nn.log_softmax(logits, axis=1)


if __name__ == "__main__":
    key = jax.random.PRNGKey(0)
    k_x1, k_x2, k_p = jax.random.split(key, 3)

    input_size = 32  # stand-in for X_train.shape[1]
    params = init_params(k_p, input_size)

    # Case 1: tiny batch (single tile, tile clamps down to 8).
    x_small = jax.random.normal(k_x1, (8, input_size), jnp.float32)
    out_small = jax.block_until_ready(ddos_classifier_forward(x_small, params))
    assert out_small.shape == (8, 2)

    # Case 2: larger batch with an explicit small tile (grid > 1 + padding/slice path).
    x_large = jax.random.normal(k_x2, (1000, input_size), jnp.float32)
    out_large = jax.block_until_ready(ddos_classifier_forward(x_large, params, tile_b=256))
    assert out_large.shape == (1000, 2)

    # Case 3: default (large) tile on the same data — single-tile fast path.
    out_large2 = jax.block_until_ready(ddos_classifier_forward(x_large, params))
    assert out_large2.shape == (1000, 2)

    for x, out in ((x_small, out_small), (x_large, out_large), (x_large, out_large2)):
        ref_bf16 = reference_forward_bf16(x, params)
        ref_f32 = reference_forward_f32(x, params)
        # Tight check vs a bf16-matmul reference (same numerics as the kernel).
        assert jnp.allclose(out, ref_bf16, atol=1e-3, rtol=1e-3), "mismatch vs bf16 reference"
        # Loose sanity check vs the pure-f32 reference (bf16 rounding tolerance).
        assert jnp.allclose(out, ref_f32, atol=1e-1, rtol=1e-1), "mismatch vs f32 reference"
        # Log-softmax rows must exponentiate-and-sum to 1.
        assert jnp.allclose(jnp.sum(jnp.exp(out), axis=1), 1.0, atol=1e-3)

    print("KERNEL_OK")
</pallas_src>

<mosaic_0001>
module attributes {stable_mosaic.version = 11 : i64} {
  func.func @mlp_kernel(%arg0: i32, %arg1: memref<8x32xf32, #tpu.memory_space<vmem>>, %arg2: memref<32x128xbf16, #tpu.memory_space<vmem>>, %arg3: memref<1x128xf32, #tpu.memory_space<vmem>>, %arg4: memref<128x64xbf16, #tpu.memory_space<vmem>>, %arg5: memref<1x64xf32, #tpu.memory_space<vmem>>, %arg6: memref<64x2xbf16, #tpu.memory_space<vmem>>, %arg7: memref<1x2xf32, #tpu.memory_space<vmem>>, %arg8: memref<8x2xf32, #tpu.memory_space<vmem>>) attributes {dimension_semantics = [#tpu.dimension_semantics<parallel>], iteration_bounds = array<i64: 1>, scalar_prefetch = 0 : i64, scratch_operands = 0 : i64, tpu.core_type = #tpu.core_type<tc>, window_params = [{transform_indices = @transform_0, window_bounds = array<i64: 8, 32>}, {pipeline_mode = #tpu.pipeline_mode<synchronous>, transform_indices = @transform_1, window_bounds = array<i64: 32, 128>}, {pipeline_mode = #tpu.pipeline_mode<synchronous>, transform_indices = @transform_2, window_bounds = array<i64: 1, 128>}, {pipeline_mode = #tpu.pipeline_mode<synchronous>, transform_indices = @transform_3, window_bounds = array<i64: 128, 64>}, {pipeline_mode = #tpu.pipeline_mode<synchronous>, transform_indices = @transform_4, window_bounds = array<i64: 1, 64>}, {pipeline_mode = #tpu.pipeline_mode<synchronous>, transform_indices = @transform_5, window_bounds = array<i64: 64, 2>}, {pipeline_mode = #tpu.pipeline_mode<synchronous>, transform_indices = @transform_6, window_bounds = array<i64: 1, 2>}, {transform_indices = @transform_7, window_bounds = array<i64: 8, 2>}]} {
    %c0 = arith.constant 0 : index
    %c0_0 = arith.constant 0 : index
    %0 = vector.load %arg1[%c0, %c0_0] : memref<8x32xf32, #tpu.memory_space<vmem>>, vector<8x32xf32>
    %1 = arith.truncf %0 : vector<8x32xf32> to vector<8x32xbf16>
    %c0_1 = arith.constant 0 : index
    %c0_2 = arith.constant 0 : index
    %2 = vector.load %arg2[%c0_1, %c0_2] : memref<32x128xbf16, #tpu.memory_space<vmem>>, vector<32x128xbf16>
    %cst = arith.constant dense<0.000000e+00> : vector<8x128xf32>
    %3 = tpu.matmul %1, %2, %cst {dimension_numbers = #tpu.dot_dimension_numbers<[1], [0], [0], [1], [0, 0, 1, 1], [], []>} : vector<8x32xbf16>, vector<32x128xbf16>, vector<8x128xf32> -> vector<8x128xf32>
    %c0_3 = arith.constant 0 : index
    %c0_4 = arith.constant 0 : index
    %4 = vector.load %arg3[%c0_3, %c0_4] : memref<1x128xf32, #tpu.memory_space<vmem>>, vector<1x128xf32>
    %5 = vector.broadcast %4 : vector<1x128xf32> to vector<8x128xf32>
    %6 = arith.addf %3, %5 : vector<8x128xf32>
    %cst_5 = arith.constant 0.000000e+00 : f32
    %7 = vector.broadcast %cst_5 : f32 to vector<8x128xf32>
    %8 = arith.maximumf %6, %7 : vector<8x128xf32>
    %9 = arith.truncf %8 : vector<8x128xf32> to vector<8x128xbf16>
    %c0_6 = arith.constant 0 : index
    %c0_7 = arith.constant 0 : index
    %10 = vector.load %arg4[%c0_6, %c0_7] : memref<128x64xbf16, #tpu.memory_space<vmem>>, vector<128x64xbf16>
    %cst_8 = arith.constant dense<0.000000e+00> : vector<8x64xf32>
    %11 = tpu.matmul %9, %10, %cst_8 {dimension_numbers = #tpu.dot_dimension_numbers<[1], [0], [0], [1], [0, 0, 1, 1], [], []>} : vector<8x128xbf16>, vector<128x64xbf16>, vector<8x64xf32> -> vector<8x64xf32>
    %c0_9 = arith.constant 0 : index
    %c0_10 = arith.constant 0 : index
    %12 = vector.load %arg5[%c0_9, %c0_10] : memref<1x64xf32, #tpu.memory_space<vmem>>, vector<1x64xf32>
    %13 = vector.broadcast %12 : vector<1x64xf32> to vector<8x64xf32>
    %14 = arith.addf %11, %13 : vector<8x64xf32>
    %cst_11 = arith.constant 0.000000e+00 : f32
    %15 = vector.broadcast %cst_11 : f32 to vector<8x64xf32>
    %16 = arith.maximumf %14, %15 : vector<8x64xf32>
    %17 = arith.truncf %16 : vector<8x64xf32> to vector<8x64xbf16>
    %c0_12 = arith.constant 0 : index
    %c0_13 = arith.constant 0 : index
    %18 = vector.load %arg6[%c0_12, %c0_13] : memref<64x2xbf16, #tpu.memory_space<vmem>>, vector<64x2xbf16>
    %cst_14 = arith.constant dense<0.000000e+00> : vector<8x2xf32>
    %19 = tpu.matmul %17, %18, %cst_14 {dimension_numbers = #tpu.dot_dimension_numbers<[1], [0], [0], [1], [0, 0, 1, 1], [], []>} : vector<8x64xbf16>, vector<64x2xbf16>, vector<8x2xf32> -> vector<8x2xf32>
    %c0_15 = arith.constant 0 : index
    %c0_16 = arith.constant 0 : index
    %20 = vector.load %arg7[%c0_15, %c0_16] : memref<1x2xf32, #tpu.memory_space<vmem>>, vector<1x2xf32>
    %21 = vector.broadcast %20 : vector<1x2xf32> to vector<8x2xf32>
    %22 = arith.addf %19, %21 : vector<8x2xf32>
    %cst_17 = arith.constant dense<0xFF800000> : vector<8xf32>
    %23 = vector.multi_reduction <maximumf>, %22, %cst_17 [1] : vector<8x2xf32> to vector<8xf32>
    %24 = vector.shape_cast %23 : vector<8xf32> to vector<8x1xf32>
    %25 = vector.broadcast %24 : vector<8x1xf32> to vector<8x2xf32>
    %26 = arith.subf %22, %25 : vector<8x2xf32>
    %27 = math.exp %26 : vector<8x2xf32>
    %cst_18 = arith.constant dense<0.000000e+00> : vector<8xf32>
    %28 = vector.multi_reduction <add>, %27, %cst_18 [1] : vector<8x2xf32> to vector<8xf32>
    %29 = vector.shape_cast %28 : vector<8xf32> to vector<8x1xf32>
    %30 = math.log %29 : vector<8x1xf32>
    %31 = vector.broadcast %30 : vector<8x1xf32> to vector<8x2xf32>
    %32 = arith.subf %26, %31 : vector<8x2xf32>
    %c0_19 = arith.constant 0 : index
    %c0_20 = arith.constant 0 : index
    %33 = vector.load %arg8[%c0_19, %c0_20] : memref<8x2xf32, #tpu.memory_space<vmem>>, vector<8x2xf32>
    tpu.vector_store %arg8[%c0_19, %c0_20], %32 {strides = array<i32>} : memref<8x2xf32, #tpu.memory_space<vmem>>, vector<8x2xf32>,
    return
  }
  func.func @transform_0(%arg0: i32) -> (i32, i32) {
    %c0_i32 = arith.constant 0 : i32
    %c0_i32_0 = arith.constant 0 : i32
    return %arg0, %c0_i32 : i32, i32
  }
  func.func @transform_1(%arg0: i32) -> (i32, i32) {
    %c0_i32 = arith.constant 0 : i32
    %c0_i32_0 = arith.constant 0 : i32
    %c0_i32_1 = arith.constant 0 : i32
    return %c0_i32, %c0_i32_0 : i32, i32
  }
  func.func @transform_2(%arg0: i32) -> (i32, i32) {
    %c0_i32 = arith.constant 0 : i32
    %c0_i32_0 = arith.constant 0 : i32
    %c0_i32_1 = arith.constant 0 : i32
    return %c0_i32, %c0_i32_0 : i32, i32
  }
  func.func @transform_3(%arg0: i32) -> (i32, i32) {
    %c0_i32 = arith.constant 0 : i32
    %c0_i32_0 = arith.constant 0 : i32
    %c0_i32_1 = arith.constant 0 : i32
    return %c0_i32, %c0_i32_0 : i32, i32
  }
  func.func @transform_4(%arg0: i32) -> (i32, i32) {
    %c0_i32 = arith.constant 0 : i32
    %c0_i32_0 = arith.constant 0 : i32
    %c0_i32_1 = arith.constant 0 : i32
    return %c0_i32, %c0_i32_0 : i32, i32
  }
  func.func @transform_5(%arg0: i32) -> (i32, i32) {
    %c0_i32 = arith.constant 0 : i32
    %c0_i32_0 = arith.constant 0 : i32
    %c0_i32_1 = arith.constant 0 : i32
    return %c0_i32, %c0_i32_0 : i32, i32
  }
  func.func @transform_6(%arg0: i32) -> (i32, i32) {
    %c0_i32 = arith.constant 0 : i32
    %c0_i32_0 = arith.constant 0 : i32
    %c0_i32_1 = arith.constant 0 : i32
    return %c0_i32, %c0_i32_0 : i32, i32
  }
  func.func @transform_7(%arg0: i32) -> (i32, i32) {
    %c0_i32 = arith.constant 0 : i32
    %c0_i32_0 = arith.constant 0 : i32
    return %arg0, %c0_i32 : i32, i32
  }
}

</mosaic_0001>

<bundles_post_ra>
// kernel: tpu_custom_call.1
= control target key start
LH: loop header
LB: loop body
LE: loop exit
PB: predicated region body
PF: predicated region fallthrough
CT: control target
= control target key end

     0   :  { %v408_v0 = vmov 0.0   ;;  %vm409_vm0 = vmmov 0   ;;  %vm52_vm1 = vcmask 261120   ;;  %vm250_vm2 = vcmask 523264   ;;  %s513_s1 = inlined_call_operand.vmem [shape: bf16[32,128], index: 1, kind: input, shape index: {}]   ;;  %s514_s0 = inlined_call_operand.vmem [shape: f32[8,32], index: 0, kind: input, shape index: {}]   ;;  %s515_s3 = inlined_call_operand.vmem [shape: bf16[128,64], index: 3, kind: input, shape index: {}]   ;;  %s516_s5 = inlined_call_operand.vmem [shape: bf16[64,2], index: 5, kind: input, shape index: {}]   ;;  %s517_s2 = inlined_call_operand.vmem [shape: f32[1,128], index: 2, kind: input, shape index: {}]   ;;  %s518_s4 = inlined_call_operand.vmem [shape: f32[1,64], index: 4, kind: input, shape index: {}]   ;;  %s519_s6 = inlined_call_operand.vmem [shape: f32[1,2], index: 6, kind: input, shape index: {}]   ;;  %s520_s7 = inlined_call_operand.vmem [shape: f32[8,2], index: 7, kind: output, shape index: {}]  }
   0x1   :  { %348 = vmatprep.subr.bf16.mxu0 %v408_v0  ;;  %v390_v1 = vld [vmem:[%s513_s1 + $0x8] sm:$0xff]   ;;  %352 = vmatprep.mubr.msk.bf16.mxu0 %vm409_vm0, %v408_v0  ;;  %v391_v2 = vld [vmem:[%s513_s1] sm:$0xff]   ;;  %v392_v4 = vld [vmem:[%s515_s3 + $0x38] sm:$0xff]   ;;  %vm294_vm3 = vcmask 15360  }
   0x2   :  { %356 = vmatprep.subr.bf16.mxu1 %v408_v0  ;;  %372 = vmatprep.mubr.msk.bf16.mxu1 %vm409_vm0, %v408_v0  ;;  %v27_v3 = vld [vmem:[%s514_s0] sm:$0xff]  ;;  %v393_v6 = vld [vmem:[%s515_s3 + $0x30] sm:$0xff]   ;;  %v394_v7 = vld [vmem:[%s515_s3 + $0x28] sm:$0xff]  }
   0x3   :  { %349 = vmatpush3.bf16.msra.mxu0 %v390_v1  ;;  %v28_v5 = vpack.c.bf16 %v27_v3, %v27_v3  ;;  %357 = vmatpush3.bf16.msra.mxu1 %v392_v4  ;;  %v395_v8 = vld [vmem:[%s515_s3 + $0x20] sm:$0xff]   ;;  %v396_v9 = vld [vmem:[%s515_s3 + $0x18] sm:$0xff]   ;;  %v397_v10 = vld [vmem:[%s515_s3 + $0x10] sm:$0xff]  }
   0x4   :  { %350 = vmatprep.subr.bf16.mxu0 %v408_v0  ;;  %358 = vmatprep.subr.bf16.mxu1 %v408_v0  ;;  %v398_v11 = vld [vmem:[%s515_s3 + $0x8] sm:$0xff]   ;;  %v399_v12 = vld [vmem:[%s515_s3] sm:$0xff]   ;;  %v400_v13 = vld [vmem:[%s516_s5 + $0x18] sm:$0xff]  }
   0x5   :  { %v401_v14 = vld [vmem:[%s516_s5 + $0x10] sm:$0xff]   ;;  %v312_v15 = vld [vmem:[%s517_s2] ss:$0 sm:$0xff]  ;;  %v402_v23 = vld [vmem:[%s516_s5 + $0x8] sm:$0xff]  }
   0x6   :  { %v403_v24 = vld [vmem:[%s516_s5] sm:$0xff]  }
   0x7   :  { %351 = vmatpush3.bf16.msra.mxu0 %v391_v2  ;;  %359 = vmatpush3.bf16.msra.mxu1 %v393_v6  ;;  %v316_v25 = vld [vmem:[%s518_s4] ss:$0 sm:$0xff] }
   0x8   :  { %376 = vmatprep.subr.bf16.mxu0 %v408_v0  ;;  %360 = vmatprep.subr.bf16.mxu1 %v408_v0  ;;  %v325_v33 = vld [vmem:[%s519_s6] ss:$0 sm:$0xff] }
   0xa   :  { %353 = vmatmul.mubr.msk.bf16.vlgmr.msra.gmra.mxu0 %vm52_vm1, %v28_v5 }
   0xb   :  { %384 = vmatprep.mubr.msk.bf16.mxu0 %vm409_vm0, %v408_v0  ;;  %361 = vmatpush3.bf16.msra.mxu1 %v394_v7 }
   0xc   :  { %362 = vmatprep.subr.bf16.mxu1 %v408_v0  ;;  %377 = vmatpush3.bf16.msra.mxu0 %v400_v13 }
   0xd   :  { %378 = vmatprep.subr.bf16.mxu0 %v408_v0 }
   0xf   :  { %363 = vmatpush3.bf16.msra.mxu1 %v395_v8 }
  0x10   :  { %364 = vmatprep.subr.bf16.mxu1 %v408_v0  ;;  %379 = vmatpush3.bf16.msra.mxu0 %v401_v14 }
  0x11   :  { %380 = vmatprep.subr.bf16.mxu0 %v408_v0 }
  0x13   :  { %365 = vmatpush3.bf16.msra.mxu1 %v396_v9 }
  0x14   :  { %366 = vmatprep.subr.bf16.mxu1 %v408_v0  ;;  %381 = vmatpush3.bf16.msra.mxu0 %v402_v23 }
  0x15   :  { %382 = vmatprep.subr.bf16.mxu0 %v408_v0 }
  0x17   :  { %367 = vmatpush3.bf16.msra.mxu1 %v397_v10 }
  0x18   :  { %368 = vmatprep.subr.bf16.mxu1 %v408_v0  ;;  %383 = vmatpush3.bf16.msra.mxu0 %v403_v24 }
  0x1b   :  { %369 = vmatpush3.bf16.msra.mxu1 %v398_v11 }
  0x1c   :  { %370 = vmatprep.subr.bf16.mxu1 %v408_v0 }
  0x1f   :  { %371 = vmatpush3.bf16.msra.mxu1 %v399_v12 }
  0xca   :  { %v90_v16 = vpop.f32.mrf.mxu0 }
  0xcb   :  { %v91_v17 = vadd.f32 %v312_v15, %v90_v16 }
  0xcc   :  { %v354_v18 = vpop.f32.mrf.mxu0 }
  0xcd   :  { %v96_v19 = vmax.f32 %v91_v17, 0.0 }
  0xce   :  { %v93_v20 = vpop.f32.mrf.mxu0 }
  0xcf   :  { %v97_v21 = vpack.c.bf16 %v96_v19, %v96_v19 }
  0xd0   :  { %v355_v22 = vpop.f32.mrf.mxu0 }
  0xd1   :  { %373 = vmatmul.mubr.bf16.vlgmr.msra.gmra.mxu1 %v97_v21 }
 0x191   :  { %v203_v26 = vpop.f32.mrf.mxu1 }
 0x192   :  { %v204_v27 = vadd.f32 %v316_v25, %v203_v26 }
 0x193   :  { %v374_v28 = vpop.f32.mrf.mxu1 }
 0x194   :  { %v209_v29 = vmax.f32 %v204_v27, 0.0 }
 0x195   :  { %v206_v30 = vpop.f32.mrf.mxu1 }
 0x196   :  { %v210_v31 = vpack.c.bf16 %v209_v29, %v209_v29 }
 0x197   :  { %v375_v32 = vpop.f32.mrf.mxu1 }
 0x198   :  { %385 = vmatmul.mubr.msk.bf16.vlgmr.msra.gmra.mxu0 %vm250_vm2, %v210_v31 }
 0x258   :  { %v288_v34 = vpop.f32.mrf.mxu0 }
 0x259   :  { %v289_v35 = vadd.f32 %v325_v33, %v288_v34 }
 0x25a   :  { %v386_v36 = vpop.f32.mrf.mxu0 }
 0x25b   :  { %v295_v37 = vsel %vm294_vm3, %v289_v35, -inf }
 0x25c   :  { %296 = vmax.xlane.f32.xlu0 %v295_v37  ;;  %v291_v38 = vpop.f32.mrf.mxu0 }
 0x25e   :  { %v387_v39 = vpop.f32.mrf.mxu0 }
 0x2e5   :  { %v297_v40 = vpop.xlane.xlu0 %296 }
 0x2e6   :  { %v298_v41 = vsub.f32 %v289_v35, %v297_v40 }
 0x2e8   :  { %v299_v42 = vmul.f32 1.442695, %v298_v41 }
 0x2ea   :  { %404 = vpow2.f32 %v299_v42 }
 0x2f7   :  { %v405_v43 = vpop.eup %404 }
 0x2f8   :  { %v301_v44 = vsel %vm294_vm3, %v405_v43, 0.0 }
 0x2f9   :  { %302 = vadd.xlane.f32.xlu0 %v301_v44 }
 0x382   :  { %v303_v45 = vpop.xlane.xlu0 %302 }
 0x383   :  { %406 = vlog2.f32 %v303_v45 }
 0x390   :  { %v407_v46 = vpop.eup %406 }
 0x391   :  { %v305_v47 = vmul.f32 0.6931472, %v407_v46 }
 0x393   :  { %v306_v48 = vsub.f32 %v298_v41, %v305_v47 }
 0x395   :  { %307 = vst.msk [vmem:[%s520_s7] sm:$0xff] %vm294_vm3, %v306_v48 }

</bundles_post_ra>
